<compile_context>
chip_gen: v7x
topology: tpu7x:2x2x1
jax: 0.10.0
libtpu: 0.0.40
codegen_flags: <defaults>
</compile_context>

<pallas_src>
import functools

import jax
import jax.numpy as jnp
import numpy as np
from jax.experimental import pallas as pl
from jax.experimental.pallas import tpu as pltpu

LN_EPS = 1e-5       # nn.LayerNorm default eps
NEG_SLOPE = 0.1     # LeakyReLU(negative_slope=0.1)
LANE = 128          # TPU lane width


def _round_up(n, m):
    return ((n + m - 1) // m) * m


def _pad_cols(a, n):
    a = np.asarray(a, np.float32)
    return np.pad(a, ((0, 0), (0, n - a.shape[1])))


# ----------------------------------------------------------------------------
# Kernel
# ----------------------------------------------------------------------------
def _bl_kernel(mean_ref, x_ref, w_in_ref, b_in_ref, w4_ref, b4_ref,
               g_ref, be_ref, o_ref, *, k, hid2):
    x = x_ref[...]

    # One fused MXU push for [fc11 | cla | fc12@fc3], each segment 128 lanes.
    y = jnp.dot(x, w_in_ref[...], preferred_element_type=jnp.float32) + b_in_ref[...]
    long_pre = y[:, :LANE]                       # pool-major permuted; padded lanes 0
    cla_pre = y[:, LANE:2 * LANE]
    short2 = y[:, 2 * LANE:2 * LANE + hid2]      # fc3 already folded in (lane offset 256)

    # ---------------- long_cla_module (dropout = identity in eval) ----------
    long_act = jnp.where(long_pre >= 0.0, long_pre, NEG_SLOPE * long_pre)
    cla = jax.nn.sigmoid(cla_pre)
    al = long_act * cla                          # padded lanes: 0 * 0.5 = 0

    # MaxPool1d(kernel=k, stride=k): columns are pool-major, so pool element j
    # of output c sits at lane j*hid2 + c.  (k-1) XLU rolls + VPU max.
    m = al
    for j in range(1, k):
        m = jnp.maximum(m, pltpu.roll(al, shift=LANE - j * hid2, axis=1))
    maxp = m[:, :hid2]                           # offset-0 lane slice, cheap

    # ---------------- short_cla_module --------------------------------------
    # Global scalar mean(short2) is precomputed in the wrapper (SMEM scalar).
    gmean = mean_ref[0, 0]
    cust = jnp.tanh(short2 - gmean) * short2
    mu = jnp.mean(cust, axis=-1, keepdims=True)
    var = jnp.mean((cust - mu) ** 2, axis=-1, keepdims=True)
    cust = (cust - mu) * jax.lax.rsqrt(var + LN_EPS) * g_ref[...] + be_ref[...]

    # ---------------- fc4 (lane-dense 128-multiple padded output) -----------
    out = jnp.dot(cust * maxp, w4_ref[...], preferred_element_type=jnp.float32) + b4_ref[...]
    o_ref[...] = out.astype(o_ref.dtype)


# ----------------------------------------------------------------------------
# Parameter construction (PyTorch-style init) and one-time host-side packing.
# ----------------------------------------------------------------------------
def linear_params(key, fan_in, fan_out):
    kw, kb = jax.random.split(key)
    bound = 1.0 / np.sqrt(fan_in)
    w = jax.random.uniform(kw, (fan_in, fan_out), jnp.float32, -bound, bound)
    b = jax.random.uniform(kb, (1, fan_out), jnp.float32, -bound, bound)
    return w, b


def make_params(key, in_, hid, hid2, out_):
    k11, kcla, k12, k3, k4 = jax.random.split(key, 5)
    w11, b11 = linear_params(k11, in_, hid)
    wcla, bcla = linear_params(kcla, in_, hid)
    w12, b12 = linear_params(k12, in_, hid)
    w3, b3 = linear_params(k3, hid, hid2)
    w4, b4 = linear_params(k4, hid2, out_)
    # Extra nn.Parameter biases (fc11_b, cla_b, fc12_b, fc3_b) are zeros -> omitted.
    gamma = jnp.ones((1, hid2), jnp.float32)     # LayerNorm affine (default init)
    beta = jnp.zeros((1, hid2), jnp.float32)
    return (w11, b11, wcla, bcla, w12, b12, w3, b3, w4, b4, gamma, beta)


def prep_kernel_params(params):
    """Host-side packing. Call ONCE; result is reused by every forward call."""
    (w11, b11, wcla, bcla, w12, b12, w3, b3, w4, b4, g, be) = \
        [np.asarray(p, np.float32) for p in params]
    in_ = w11.shape[0]
    hid = w11.shape[1]
    hid2 = w3.shape[1]
    out_ = w4.shape[1]
    k = hid // hid2
    assert k * hid2 == hid and hid <= LANE

    # Pool-major column permutation: new col j*hid2 + c  <-  old col k*c + j.
    perm = np.empty(hid, np.int64)
    for c in range(hid2):
        for j in range(k):
            perm[j * hid2 + c] = k * c + j
    w11_p, b11_p = w11[:, perm], b11[:, perm]
    wcla_p, bcla_p = wcla[:, perm], bcla[:, perm]

    # Fold fc3 into fc12 (no nonlinearity between them): short2 = x @ w_s2 + b_s2.
    w_s2 = (w12.astype(np.float64) @ w3.astype(np.float64)).astype(np.float32)
    b_s2 = (b12.astype(np.float64) @ w3.astype(np.float64)
            + b3.astype(np.float64)).astype(np.float32)

    # Fused input-side weight/bias: three 128-lane segments.
    w_in = np.concatenate([_pad_cols(w11_p, LANE), _pad_cols(wcla_p, LANE),
                           _pad_cols(w_s2, LANE)], axis=1)
    b_in = np.concatenate([_pad_cols(b11_p, LANE), _pad_cols(bcla_p, LANE),
                           _pad_cols(b_s2, LANE)], axis=1)

    # fc4 padded to a multiple of 128 lanes (unmasked full-lane store).
    out_pad = int(pl.cdiv(out_, LANE)) * LANE
    w4_p = _pad_cols(w4, out_pad)
    b4_p = _pad_cols(b4, out_pad)

    return dict(
        w_in=jnp.asarray(w_in), b_in=jnp.asarray(b_in),
        w4=jnp.asarray(w4_p), b4=jnp.asarray(b4_p),
        gamma=jnp.asarray(g), beta=jnp.asarray(be),
        w_s2=jnp.asarray(w_s2), b_s2=jnp.asarray(b_s2),
        in_=in_, hid2=hid2, k=k, out_=out_, out_pad=out_pad)


# ----------------------------------------------------------------------------
# Forward wrapper (jitted; packed weights closed over).
# ----------------------------------------------------------------------------
def make_bl_forward(packed, tile_b=512):
    in_, hid2, k = packed['in_'], packed['hid2'], packed['k']
    out_, out_pad = packed['out_'], packed['out_pad']
    w_in, b_in = packed['w_in'], packed['b_in']
    w4, b4 = packed['w4'], packed['b4']
    g, be = packed['gamma'], packed['beta']
    w_s2, b_s2 = packed['w_s2'], packed['b_s2']

    kernel = functools.partial(_bl_kernel, k=k, hid2=hid2)

    def forward(x):
        B = x.shape[0]
        tb = min(tile_b, _round_up(B, 8))        # f32 sublane multiple
        b_pad = _round_up(B, tb)
        nb = b_pad // tb

        # Global mean(short2) over the *unpadded* batch, via linearity of the
        # fused fc12->fc3 path (exact); keeps the batch grid tiles independent.
        gmean = jnp.mean(jnp.mean(x, axis=0, keepdims=True) @ w_s2 + b_s2)
        gmean = jnp.reshape(gmean, (1, 1)).astype(jnp.float32)

        x_p = x if b_pad == B else jnp.pad(x, ((0, b_pad - B), (0, 0)))

        flops = int(2 * b_pad * (in_ * w_in.shape[1] + hid2 * out_pad))
        transcendentals = int(b_pad * (LANE + 2 * hid2))
        bytes_accessed = int(4 * (b_pad * (in_ + out_pad) + w_in.size + b_in.size
                                  + w4.size + b4.size + g.size + be.size))

        def wspec(shape):
            return pl.BlockSpec(shape, lambda i: (0, 0))   # VMEM-resident weights

        out_padded = pl.pallas_call(
            kernel,
            out_shape=jax.ShapeDtypeStruct((b_pad, out_pad), jnp.float32),
            grid=(nb,),
            in_specs=[
                pl.BlockSpec(memory_space=pltpu.MemorySpace.SMEM),   # gmean (1,1)
                pl.BlockSpec((tb, in_), lambda i: (i, 0)),           # x row tile
                wspec(w_in.shape), wspec(b_in.shape),
                wspec(w4.shape), wspec(b4.shape),
                wspec(g.shape), wspec(be.shape),
            ],
            out_specs=pl.BlockSpec((tb, out_pad), lambda i: (i, 0)),
            compiler_params=pltpu.CompilerParams(
                dimension_semantics=("parallel",)),
            cost_estimate=pl.CostEstimate(flops=flops,
                                          transcendentals=transcendentals,
                                          bytes_accessed=bytes_accessed),
        )(gmean, x_p, w_in, b_in, w4, b4, g, be)
        return out_padded[:B, :out_]

    return jax.jit(forward)


# ----------------------------------------------------------------------------
# Pure-JAX reference mirroring the PyTorch forward (eval mode).
# ----------------------------------------------------------------------------
def bl_reference(x, params):
    (w11, b11, wcla, bcla, w12, b12, w3, b3, w4, b4, g, be) = params
    long = x @ w11 + b11
    long = jnp.where(long >= 0.0, long, NEG_SLOPE * long)
    cla = jax.nn.sigmoid(x @ wcla + bcla)
    al = long * cla
    short = x @ w12 + b12
    short2 = short @ w3 + b3
    cust = jnp.tanh(short2 - jnp.mean(short2)) * short2
    mu = jnp.mean(cust, axis=-1, keepdims=True)
    var = jnp.mean((cust - mu) ** 2, axis=-1, keepdims=True)
    cust = (cust - mu) / jnp.sqrt(var + LN_EPS) * g + be
    hid2 = cust.shape[1]
    k = al.shape[1] // hid2
    maxp = jnp.max(al.reshape(al.shape[0], hid2, k), axis=-1)
    return (cust * maxp) @ w4 + b4


if __name__ == "__main__":
    B, IN, HID, HID2, OUT = 8, 16, 64, 32, 8

    key = jax.random.PRNGKey(0)
    kx, kp = jax.random.split(key)
    x = jax.random.normal(kx, (B, IN), jnp.float32)
    params = make_params(kp, IN, HID, HID2, OUT)

    packed = prep_kernel_params(params)          # host packing: done ONCE
    bl_forward = make_bl_forward(packed)

    out = jax.block_until_ready(bl_forward(x))

    ref = bl_reference(x, params)
    np.testing.assert_allclose(np.asarray(out), np.asarray(ref), rtol=1e-4, atol=1e-4)

    print("KERNEL_OK")
</pallas_src>

<mosaic_0001>
module attributes {stable_mosaic.version = 11 : i64} {
  func.func @_bl_kernel(%arg0: i32, %arg1: memref<1x1xf32, #tpu.memory_space<smem>>, %arg2: memref<8x16xf32, #tpu.memory_space<vmem>>, %arg3: memref<16x384xf32, #tpu.memory_space<vmem>>, %arg4: memref<1x384xf32, #tpu.memory_space<vmem>>, %arg5: memref<32x128xf32, #tpu.memory_space<vmem>>, %arg6: memref<1x128xf32, #tpu.memory_space<vmem>>, %arg7: memref<1x32xf32, #tpu.memory_space<vmem>>, %arg8: memref<1x32xf32, #tpu.memory_space<vmem>>, %arg9: memref<8x128xf32, #tpu.memory_space<vmem>>) attributes {dimension_semantics = [#tpu.dimension_semantics<parallel>], iteration_bounds = array<i64: 1>, scalar_prefetch = 0 : i64, scratch_operands = 0 : i64, tpu.core_type = #tpu.core_type<tc>, window_params = [{transform_indices = @transform_0, window_bounds = array<i64: 1, 1>}, {transform_indices = @transform_1, window_bounds = array<i64: 8, 16>}, {pipeline_mode = #tpu.pipeline_mode<synchronous>, transform_indices = @transform_2, window_bounds = array<i64: 16, 384>}, {pipeline_mode = #tpu.pipeline_mode<synchronous>, transform_indices = @transform_3, window_bounds = array<i64: 1, 384>}, {pipeline_mode = #tpu.pipeline_mode<synchronous>, transform_indices = @transform_4, window_bounds = array<i64: 32, 128>}, {pipeline_mode = #tpu.pipeline_mode<synchronous>, transform_indices = @transform_5, window_bounds = array<i64: 1, 128>}, {pipeline_mode = #tpu.pipeline_mode<synchronous>, transform_indices = @transform_6, window_bounds = array<i64: 1, 32>}, {pipeline_mode = #tpu.pipeline_mode<synchronous>, transform_indices = @transform_7, window_bounds = array<i64: 1, 32>}, {transform_indices = @transform_8, window_bounds = array<i64: 8, 128>}]} {
    %c0 = arith.constant 0 : index
    %c0_0 = arith.constant 0 : index
    %0 = vector.load %arg2[%c0, %c0_0] : memref<8x16xf32, #tpu.memory_space<vmem>>, vector<8x16xf32>
    %c0_1 = arith.constant 0 : index
    %c0_2 = arith.constant 0 : index
    %1 = vector.load %arg3[%c0_1, %c0_2] : memref<16x384xf32, #tpu.memory_space<vmem>>, vector<16x384xf32>
    %cst = arith.constant dense<0.000000e+00> : vector<8x384xf32>
    %2 = tpu.matmul %0, %1, %cst {dimension_numbers = #tpu.dot_dimension_numbers<[1], [0], [0], [1], [0, 0, 1, 1], [], []>} : vector<8x16xf32>, vector<16x384xf32>, vector<8x384xf32> -> vector<8x384xf32>
    %c0_3 = arith.constant 0 : index
    %c0_4 = arith.constant 0 : index
    %3 = vector.load %arg4[%c0_3, %c0_4] : memref<1x384xf32, #tpu.memory_space<vmem>>, vector<1x384xf32>
    %4 = vector.broadcast %3 : vector<1x384xf32> to vector<8x384xf32>
    %5 = arith.addf %2, %4 : vector<8x384xf32>
    %6 = vector.extract_strided_slice %5 {offsets = [0, 0], sizes = [8, 128], strides = [1, 1]} : vector<8x384xf32> to vector<8x128xf32>
    %7 = vector.extract_strided_slice %5 {offsets = [0, 128], sizes = [8, 128], strides = [1, 1]} : vector<8x384xf32> to vector<8x128xf32>
    %8 = vector.extract_strided_slice %5 {offsets = [0, 256], sizes = [8, 32], strides = [1, 1]} : vector<8x384xf32> to vector<8x32xf32>
    %cst_5 = arith.constant 0.000000e+00 : f32
    %9 = vector.broadcast %cst_5 : f32 to vector<8x128xf32>
    %10 = arith.cmpf oge, %6, %9 : vector<8x128xf32>
    %cst_6 = arith.constant 1.000000e-01 : f32
    %11 = vector.broadcast %cst_6 : f32 to vector<8x128xf32>
    %12 = arith.mulf %11, %6 : vector<8x128xf32>
    %13 = arith.select %10, %6, %12 : vector<8x128xi1>, vector<8x128xf32>
    %14 = arith.negf %7 : vector<8x128xf32>
    %15 = math.exp %14 : vector<8x128xf32>
    %cst_7 = arith.constant 1.000000e+00 : f32
    %16 = vector.broadcast %cst_7 : f32 to vector<8x128xf32>
    %17 = arith.addf %16, %15 : vector<8x128xf32>
    %18 = arith.divf %16, %17 : vector<8x128xf32>
    %19 = arith.mulf %13, %18 : vector<8x128xf32>
    %c96_i32 = arith.constant 96 : i32
    %20 = tpu.dynamic_rotate %19 by %c96_i32 dim 1 : vector<8x128xf32>, i32 -> vector<8x128xf32>
    %21 = arith.maximumf %19, %20 : vector<8x128xf32>
    %22 = vector.extract_strided_slice %21 {offsets = [0, 0], sizes = [8, 32], strides = [1, 1]} : vector<8x128xf32> to vector<8x32xf32>
    %c0_8 = arith.constant 0 : index
    %c0_9 = arith.constant 0 : index
    %23 = memref.load %arg1[%c0_8, %c0_9] : memref<1x1xf32, #tpu.memory_space<smem>>
    %24 = vector.broadcast %23 : f32 to vector<8x32xf32>
    %25 = arith.subf %8, %24 : vector<8x32xf32>
    %26 = math.tanh %25 : vector<8x32xf32>
    %27 = arith.mulf %26, %8 : vector<8x32xf32>
    %cst_10 = arith.constant dense<0.000000e+00> : vector<8xf32>
    %28 = vector.multi_reduction <add>, %27, %cst_10 [1] : vector<8x32xf32> to vector<8xf32>
    %29 = vector.shape_cast %28 : vector<8xf32> to vector<8x1xf32>
    %cst_11 = arith.constant 3.200000e+01 : f32
    %30 = vector.broadcast %cst_11 : f32 to vector<8x1xf32>
    %31 = arith.divf %29, %30 : vector<8x1xf32>
    %32 = vector.broadcast %31 : vector<8x1xf32> to vector<8x32xf32>
    %33 = arith.subf %27, %32 : vector<8x32xf32>
    %34 = arith.mulf %33, %33 : vector<8x32xf32>
    %cst_12 = arith.constant dense<0.000000e+00> : vector<8xf32>
    %35 = vector.multi_reduction <add>, %34, %cst_12 [1] : vector<8x32xf32> to vector<8xf32>
    %36 = vector.shape_cast %35 : vector<8xf32> to vector<8x1xf32>
    %cst_13 = arith.constant 3.200000e+01 : f32
    %37 = vector.broadcast %cst_13 : f32 to vector<8x1xf32>
    %38 = arith.divf %36, %37 : vector<8x1xf32>
    %39 = vector.broadcast %31 : vector<8x1xf32> to vector<8x32xf32>
    %40 = arith.subf %27, %39 : vector<8x32xf32>
    %cst_14 = arith.constant 9.99999974E-6 : f32
    %41 = vector.broadcast %cst_14 : f32 to vector<8x1xf32>
    %42 = arith.addf %38, %41 : vector<8x1xf32>
    %43 = math.rsqrt %42 : vector<8x1xf32>
    %44 = vector.broadcast %43 : vector<8x1xf32> to vector<8x32xf32>
    %45 = arith.mulf %40, %44 : vector<8x32xf32>
    %c0_15 = arith.constant 0 : index
    %c0_16 = arith.constant 0 : index
    %46 = vector.load %arg7[%c0_15, %c0_16] : memref<1x32xf32, #tpu.memory_space<vmem>>, vector<1x32xf32>
    %47 = vector.broadcast %46 : vector<1x32xf32> to vector<8x32xf32>
    %48 = arith.mulf %45, %47 : vector<8x32xf32>
    %c0_17 = arith.constant 0 : index
    %c0_18 = arith.constant 0 : index
    %49 = vector.load %arg8[%c0_17, %c0_18] : memref<1x32xf32, #tpu.memory_space<vmem>>, vector<1x32xf32>
    %50 = vector.broadcast %49 : vector<1x32xf32> to vector<8x32xf32>
    %51 = arith.addf %48, %50 : vector<8x32xf32>
    %52 = arith.mulf %51, %22 : vector<8x32xf32>
    %c0_19 = arith.constant 0 : index
    %c0_20 = arith.constant 0 : index
    %53 = vector.load %arg5[%c0_19, %c0_20] : memref<32x128xf32, #tpu.memory_space<vmem>>, vector<32x128xf32>
    %cst_21 = arith.constant dense<0.000000e+00> : vector<8x128xf32>
    %54 = tpu.matmul %52, %53, %cst_21 {dimension_numbers = #tpu.dot_dimension_numbers<[1], [0], [0], [1], [0, 0, 1, 1], [], []>} : vector<8x32xf32>, vector<32x128xf32>, vector<8x128xf32> -> vector<8x128xf32>
    %c0_22 = arith.constant 0 : index
    %c0_23 = arith.constant 0 : index
    %55 = vector.load %arg6[%c0_22, %c0_23] : memref<1x128xf32, #tpu.memory_space<vmem>>, vector<1x128xf32>
    %56 = vector.broadcast %55 : vector<1x128xf32> to vector<8x128xf32>
    %57 = arith.addf %54, %56 : vector<8x128xf32>
    %c0_24 = arith.constant 0 : index
    %c0_25 = arith.constant 0 : index
    %58 = vector.load %arg9[%c0_24, %c0_25] : memref<8x128xf32, #tpu.memory_space<vmem>>, vector<8x128xf32>
    tpu.vector_store %arg9[%c0_24, %c0_25], %57 {strides = array<i32>} : memref<8x128xf32, #tpu.memory_space<vmem>>, vector<8x128xf32>,
    return
  }
  func.func @transform_0(%arg0: i32) -> (i32, i32) {
    %c0_i32 = arith.constant 0 : i32
    %c0_i32_0 = arith.constant 0 : i32
    %c0_i32_1 = arith.constant 0 : i32
    return %c0_i32, %c0_i32_0 : i32, i32
  }
  func.func @transform_1(%arg0: i32) -> (i32, i32) {
    %c0_i32 = arith.constant 0 : i32
    %c0_i32_0 = arith.constant 0 : i32
    return %arg0, %c0_i32 : i32, i32
  }
  func.func @transform_2(%arg0: i32) -> (i32, i32) {
    %c0_i32 = arith.constant 0 : i32
    %c0_i32_0 = arith.constant 0 : i32
    %c0_i32_1 = arith.constant 0 : i32
    return %c0_i32, %c0_i32_0 : i32, i32
  }
  func.func @transform_3(%arg0: i32) -> (i32, i32) {
    %c0_i32 = arith.constant 0 : i32
    %c0_i32_0 = arith.constant 0 : i32
    %c0_i32_1 = arith.constant 0 : i32
    return %c0_i32, %c0_i32_0 : i32, i32
  }
  func.func @transform_4(%arg0: i32) -> (i32, i32) {
    %c0_i32 = arith.constant 0 : i32
    %c0_i32_0 = arith.constant 0 : i32
    %c0_i32_1 = arith.constant 0 : i32
    return %c0_i32, %c0_i32_0 : i32, i32
  }
  func.func @transform_5(%arg0: i32) -> (i32, i32) {
    %c0_i32 = arith.constant 0 : i32
    %c0_i32_0 = arith.constant 0 : i32
    %c0_i32_1 = arith.constant 0 : i32
    return %c0_i32, %c0_i32_0 : i32, i32
  }
  func.func @transform_6(%arg0: i32) -> (i32, i32) {
    %c0_i32 = arith.constant 0 : i32
    %c0_i32_0 = arith.constant 0 : i32
    %c0_i32_1 = arith.constant 0 : i32
    return %c0_i32, %c0_i32_0 : i32, i32
  }
  func.func @transform_7(%arg0: i32) -> (i32, i32) {
    %c0_i32 = arith.constant 0 : i32
    %c0_i32_0 = arith.constant 0 : i32
    %c0_i32_1 = arith.constant 0 : i32
    return %c0_i32, %c0_i32_0 : i32, i32
  }
  func.func @transform_8(%arg0: i32) -> (i32, i32) {
    %c0_i32 = arith.constant 0 : i32
    %c0_i32_0 = arith.constant 0 : i32
    return %arg0, %c0_i32 : i32, i32
  }
}

</mosaic_0001>

<bundles_post_ra>
// kernel: forward.1
= control target key start
LH: loop header
LB: loop body
LE: loop exit
PB: predicated region body
PF: predicated region fallthrough
CT: control target
= control target key end

     0   :  { %14 = vsyncpa [#allocation4], 0  ;;  %s650_s0 = inlined_call_operand.<no memory space> [shape: f32[1,1], index: 0, kind: input, shape index: {}]   ;;  %s651_s1 = inlined_call_operand.vmem [shape: f32[8,16], index: 1, kind: input, shape index: {}]   ;;  %s652_s2 = inlined_call_operand.vmem [shape: f32[16,384], index: 2, kind: input, shape index: {}]   ;;  %s653_s3 = inlined_call_operand.hbm [shape: f32[1,384], index: 3, kind: input, shape index: {}]   ;;  %s654_s4 = inlined_call_operand.hbm [shape: f32[32,128], index: 4, kind: input, shape index: {}]   ;;  %s655_s5 = inlined_call_operand.vmem [shape: f32[1,128], index: 5, kind: input, shape index: {}]   ;;  %s656_s6 = inlined_call_operand.vmem [shape: f32[1,32], index: 6, kind: input, shape index: {}]   ;;  %s657_s7 = inlined_call_operand.vmem [shape: f32[1,32], index: 7, kind: input, shape index: {}]   ;;  %s658_s8 = inlined_call_operand.hbm [shape: f32[8,128], index: 8, kind: output, shape index: {}]  }
   0x1   :  { %15 = vsyncpa [#allocation7], 0 }
   0x2   :  { %16 = vsyncpa [#allocation5], 0  ;;  %s512_s27 = smov [#allocation3]   ;;  %s513_s29 = smov [#allocation6]  }
   0x3   :  { %s29_s28 = sshll.u32 %s512_s27, 4  ;;  %s38_s30 = sshll.u32 %s513_s29, 4  ;;  %s30_s28 = int_to_ptr.vmem [resolvable:$true] %s29_s28  ;;  %s566_s30 = int_to_ptr.vmem [resolvable:$true] %s38_s30 }
   0x4   :  { %s440_s11 = scalar_lea.hbm %s653_s3, 48 }
   0x5   :  { %p441_p0 = scmp.ne.s32.totalorder %s653_s3, %s440_s11  ;;  %p444_p1 = scmp.lt.u32.totalorder %s440_s11, %s653_s3 }
   0x7   :  { %p446_p2 = pnand %p444_p1, %p441_p0 }
   0x9   :  { %449 = shalt.err (!%p446_p2)
}
   0xa   :  { %s450_s16 = scalar_lea.vmem %s30_s28, 48  ;;  %s454_s17 = scalar_lea.vmem %s30_s28, 64 }
   0xb   :  { %p451_p3 = scmp.ne.s32.totalorder %s30_s28, %s450_s16  ;;  %p455_p4 = scmp.lt.s32.totalorder %s30_s28, %s30_s28 }
   0xc   :  { %p456_p5 = scmp.lt.s32.totalorder %s454_s17, %s450_s16 }
   0xe   :  { %p457_p6 = por %p456_p5, %p455_p4 }
  0x10   :  { %p458_p7 = pnand %p457_p6, %p451_p3 }
  0x12   :  { %461 = shalt.err (!%p458_p7)
}
  0x13   :  { %32 = dma.hbm_to_vmem [thread:$0]  %s653_s3, 48, %s30_s28, [#allocation4]  }
  0x14   :  { %s462_s22 = scalar_lea.hbm %s654_s4, 512 }
  0x15   :  { %p463_p8 = scmp.ne.s32.totalorder %s654_s4, %s462_s22  ;;  %p466_p9 = scmp.lt.u32.totalorder %s462_s22, %s654_s4 }
  0x17   :  { %p468_p10 = pnand %p466_p9, %p463_p8 }
  0x19   :  { %471 = shalt.err (!%p468_p10)
}
  0x1a   :  { %s472_s27 = scalar_lea.vmem %s566_s30, 512  ;;  %p477_p12 = scmp.lt.s32.totalorder %s566_s30, %s566_s30 }
  0x1b   :  { %p473_p11 = scmp.ne.s32.totalorder %s566_s30, %s472_s27  ;;  %p478_p13 = scmp.lt.s32.totalorder %s472_s27, %s472_s27 }
  0x1d   :  { %p479_p0 = por %p478_p13, %p477_p12 }
  0x1f   :  { %p480_p1 = pnand %p479_p0, %p473_p11 }
  0x21   :  { %483 = shalt.err (!%p480_p1)
}
  0x22   :  { %s514_s3 = smov 128   ;;  %s515_s28 = smov 8  }
  0x23   :  { %44 = dma.hbm_to_vmem [thread:$0]  %s654_s4, 512, %s566_s30, [#allocation7], %s514_s3, %s514_s3, %s515_s28  }
  0x24   :  { %506 = dma.done.wait [#allocation4], 48  }
  0x25   :  { %507 = vsyncadd [#allocation4], 4294967248 }
  0x26   :  { %508 = dma.done.wait [#allocation7], 512  }
  0x27   :  { %509 = vsyncadd [#allocation7], 4294966784  ;;  %v516_v0 = vmov 0.0   ;;  %v517_v1 = vmov 0.0|0.0   ;;  %vm518_vm0 = vmmov 0   ;;  %v59_v2 = vld [vmem:[%s652_s2 + $0x8] sm:$0xff]  ;;  %v66_v12 = vlaneseq }
  0x28   :  { %149 = vmatprep.mubr.f32.mxu1 %v516_v0  ;;  %417 = vmatprep.subr.bf16.mxu0 %v517_v1  ;;  %v62_v3 = vld [vmem:[%s652_s2 + $0x20] sm:$0xff]  ;;  %v61_v6 = vld [vmem:[%s652_s2 + $0x18] sm:$0xff]  ;;  %v60_v7 = vld [vmem:[%s652_s2 + $0x10] sm:$0xff]  ;;  %vm81_vm1 = vcmask 130048   ;;  %v240_v24 = vstv %s650_s0  ;;  %vm244_vm2 = vcmask 261120   ;;  %s519_s0 = smov 96  }
  0x29   :  { %407 = vmatprep.mubr.msk.f32.mxu0 %vm518_vm0, %v516_v0  ;;  %v58_v4 = vld [vmem:[%s652_s2] sm:$0xff]  ;;  %v410_v5 = vpack.c.bf16 %v62_v3, %v59_v2  ;;  %v63_v9 = vld [vmem:[%s652_s2 + $0x28] sm:$0xff]  ;;  %v67_v13 = vshrl.u32 %v66_v12, 7  ;;  %v64_v15 = vld [vmem:[#allocation3] sm:$0x7]  ;;  %s520_s3 = smov [#allocation8]  }
  0x2a   :  { %v412_v8 = vpack.c.bf16 %v61_v6, %v58_v4  ;;  %v57_v10 = vld [vmem:[%s651_s1] sm:$0xff]  ;;  %v415_v11 = vpack.c.bf16 %v63_v9, %v60_v7  ;;  %v276_v45 = vld [vmem:[#allocation6] sm:$0xff]  ;;  %v279_v49 = vld [vmem:[#allocation6 + $0x18] sm:$0xff]  ;;  %s367_s28 = sshll.u32 %s520_s3, 4  ;;  %s368_s28 = int_to_ptr.vmem [resolvable:$true] %s367_s28 }
  0x2b   :  { %411 = vmatprep.subr.bf16.mxu1 %v410_v5  ;;  %v72_v14 = vsub.s32 1, %v67_v13  ;;  %v76_v16 = vsub.s32 2, %v67_v13  ;;  %v68_v28 = vsub.s32 0, %v67_v13  ;;  %v277_v46 = vld [vmem:[#allocation6 + $0x8] sm:$0xff]  ;;  %v278_v48 = vld [vmem:[#allocation6 + $0x10] sm:$0xff]  ;;  %p489_p3 = scmp.lt.s32.totalorder %s368_s28, %s368_s28 }
  0x2c   :  { %413 = vmatpush1.bf16.msra.mxu1 %v412_v8  ;;  %v418_v47 = vpack.c.bf16 %v277_v46, %v276_v45  ;;  %v421_v50 = vpack.c.bf16 %v279_v49, %v278_v48  ;;  %v380_v55 = vld [vmem:[%s656_s6] ss:$0 sm:$0xff]  ;;  %s484_s6 = scalar_lea.vmem %s368_s28, 128 }
  0x2d   :  { %414 = vmatprep.subr.bf16.mxu1 %v517_v1  ;;  %v73_v17 = vrot.slane %v64_v15, %v72_v14  ;;  %v77_v20 = vrot.slane %v64_v15, %v76_v16  ;;  %v69_v30 = vrot.slane %v64_v15, %v68_v28  ;;  %v381_v58 = vld [vmem:[%s657_s7] ss:$0 sm:$0xff]  ;;  %p485_p2 = scmp.ne.s32.totalorder %s368_s28, %s484_s6  ;;  %p490_p4 = scmp.lt.s32.totalorder %s484_s6, %s484_s6 }
  0x2e   :  { %419 = vmatpush3.bf16.msra.mxu0 %v418_v47  ;;  %v382_v63 = vld [vmem:[%s655_s5] ss:$0 sm:$0xff] }
  0x2f   :  { %377 = vmatmul.mubr.msk.f32.vlgmr.msra.gmra.mrb[0].mxu1 %vm81_vm1, %v57_v10  ;;  %420 = vmatprep.subr.bf16.mxu0 %v517_v1  ;;  %p491_p5 = por %p490_p4, %p489_p3 }
  0x30   :  { %416 = vmatpush3.bf16.msra.mxu1 %v415_v11  ;;  %396 = vmatprep.mubr.msk.f32.mxu1 %vm518_vm0, %v516_v0 }
  0x31   :  { %p492_p6 = pnand %p491_p5, %p485_p2 }
  0x32   :  { %422 = vmatpush3.bf16.msra.mxu0 %v421_v50 }
  0x33   :  { %397 = vmatmul.mubr.msk.f32.vlgmr.msra.gmra.mrb[2].mxu1 %vm81_vm1, %v57_v10 }
 0x102   :  { %v151_v18 = vpop.f32.mrb[0].mxu1 }
 0x103   :  { %v153_v19 = vpop.f32.mrb[1].mxu1  ;;  %v152_v34 = vadd.f32 %v151_v18, %v69_v30 }
 0x104   :  { %v154_v21 = vadd.f32 %v153_v19, %v73_v17 }
 0x105   :  { %v227_v36 = vmul.f32 0.1, %v152_v34  ;;  %vm226_vm3 = vcmp.ge.f32.partialorder %v152_v34, 0.0 }
 0x106   :  { %v379_v22 = vmul.f32 -1.442695, %v154_v21  ;;  %v222_v23 = vpop.f32.mrb[2].mxu1 }
 0x107   :  { %v223_v25 = vadd.f32 %v222_v23, %v77_v20  ;;  %v398_v26 = vpop.f32.mrb[3].mxu1  ;;  %v228_v38 = vsel %vm226_vm3, %v152_v34, %v227_v36 }
 0x108   :  { %432 = vpow2.f32 %v379_v22 }
 0x109   :  { %v241_v27 = vsub.f32 %v223_v25, %v240_v24 }
 0x10b   :  { %434 = vtanh.f32 %v241_v27 }
 0x112   :  { %v433_v29 = vpop.eup %432 }
 0x113   :  { %v232_v31 = vadd.f32 1.0, %v433_v29 }
 0x115   :  { %v435_v32 = vpop.eup %434  ;;  %436 = vrcp.f32 %v232_v31 }
 0x116   :  { %v243_v33 = vmul.f32 %v435_v32, %v223_v25 }
 0x118   :  { %v245_v35 = vsel %vm244_vm2, %v243_v33, 0.0 }
 0x119   :  { %246 = vadd.xlane.f32.xlu0 %v245_v35 }
 0x11f   :  { %v437_v37 = vpop.eup %436 }
 0x120   :  { %v235_v39 = vmul.f32 %v437_v37, %v228_v38 }
 0x122   :  { %236 = vrot.lane.b32.xlu1 %v235_v39, %s519_s0 }
 0x194   :  { %v237_v57 = vpop.permute.xlu1 %236 }
 0x195   :  { %v238_v60 = vmax.f32 %v235_v39, %v237_v57 }
 0x1a6   :  { %v247_v40 = vpop.xlane.xlu0 %246 }
 0x1a7   :  { %v249_v41 = vmul.f32 0.03125, %v247_v40 }
 0x1a9   :  { %v250_v42 = vsub.f32 %v243_v33, %v249_v41 }
 0x1ab   :  { %v251_v43 = vmul.f32 %v250_v42, %v250_v42 }
 0x1ad   :  { %v252_v44 = vsel %vm244_vm2, %v251_v43, 0.0 }
 0x1ae   :  { %253 = vadd.xlane.f32.xlu0 %v252_v44 }
 0x23b   :  { %v254_v51 = vpop.xlane.xlu0 %253 }
 0x23c   :  { %v255_v52 = vmul.f32 0.03125, %v254_v51 }
 0x23e   :  { %v256_v53 = vadd.f32 1e-05, %v255_v52 }
 0x240   :  { %438 = vrsqrt.f32 %v256_v53 }
 0x24a   :  { %v439_v54 = vpop.eup %438 }
 0x24b   :  { %v258_v56 = vmul.f32 %v439_v54, %v250_v42 }
 0x24d   :  { %v266_v59 = vmul.f32 %v380_v55, %v258_v56 }
 0x24f   :  { %v274_v61 = vadd.f32 %v381_v58, %v266_v59 }
 0x251   :  { %v275_v62 = vmul.f32 %v274_v61, %v238_v60 }
 0x253   :  { %408 = vmatmul.mubr.msk.f32.vlgmr.msra.gmra.mrb[0].mxu0 %vm244_vm2, %v275_v62 }
 0x326   :  { %v356_v0 = vpop.f32.mrb[0].mxu0 }
 0x327   :  { %v357_v1 = vadd.f32 %v382_v63, %v356_v0  ;;  %v409_v2 = vpop.f32.mrb[1].mxu0 }
 0x329   :  { %360 = vst [vmem:[#allocation8] sm:$0xff] %v357_v1 }
 0x32a   :  { %495 = shalt.err (!%p492_p6)
}
 0x32b   :  { %s496_s9 = scalar_lea.hbm %s658_s8, 128 }
 0x32c   :  { %p497_p7 = scmp.ne.s32.totalorder %s658_s8, %s496_s9  ;;  %p500_p8 = scmp.lt.u32.totalorder %s496_s9, %s658_s8 }
 0x32e   :  { %p502_p9 = pnand %p500_p8, %p497_p7 }
 0x330   :  { %505 = shalt.err (!%p502_p9)
}
 0x331   :  { %370 = dma.vmem_to_hbm [thread:$0]  %s368_s28, 128, %s658_s8, [#allocation5]  }
 0x332   :  { %510 = dma.done.wait [#allocation5], 128  }
 0x333   :  { %511 = vsyncadd [#allocation5], 4294967168 }
 0x334   :  { %374 = vsyncpa [#allocation4], 1 }
 0x335   :  { %375 = vsyncpa [#allocation7], 1 }
 0x336   :  { %376 = vsyncpa [#allocation5], 1 }

</bundles_post_ra>
